<compile_context>
chip_gen: v6e
topology: v6e:2x2x1
jax: 0.10.0
libtpu: 0.0.40
codegen_flags: <defaults>
</compile_context>

<pallas_src>
import functools

import jax
import jax.numpy as jnp
from jax.experimental import pallas as pl
from jax.experimental.pallas import tpu as pltpu


def _round_up(x, m):
    return (x + m - 1) // m * m


def _vmem_capacity_bytes():
    try:
        info = pltpu.get_tpu_info()
        cap = getattr(info, "vmem_capacity_bytes", None)
        if cap:
            return int(cap)
    except Exception:
        pass
    return 64 << 20  # conservative: v7x per-TensorCore VMEM


def _edb_kernel(xt_ref, uwb_ref, iwb_ref, out_ref, *, y_range):
    """One batch tile.

    xt_ref  : (2, TB) int32    row 0 = user idx, row 1 = item idx (lane-dense)
    uwb_ref : (Fp, NUp) bf16   [u_weight | u_bias | 1]^T, zero padded
    iwb_ref : (Fp, NIp) bf16   [i_weight | 1 | i_bias]^T, zero padded
    out_ref : (1, TB) f32      lane-dense predictions
    """
    users = xt_ref[0:1, :]                       # (1, TB) int32
    items = xt_ref[1:2, :]                       # (1, TB) int32
    tb = xt_ref.shape[1]
    nu = uwb_ref.shape[1]
    ni = iwb_ref.shape[1]
    nmax = max(nu, ni)
    mm_dtype = uwb_ref.dtype

    # Single iota, sliced for both tables; emit masks directly in the matmul
    # input dtype (bf16: 0/1 are exact).
    iota = jax.lax.broadcasted_iota(jnp.int32, (nmax, tb), 0)
    u_oh = (iota[:nu, :] == users).astype(mm_dtype)       # (NUp, TB)
    i_oh = (iota[:ni, :] == items).astype(mm_dtype)       # (NIp, TB)

    # Fused gather: one bf16 MXU pass per table yields the F embedding rows
    # plus the bias row and a constant-one row, batch on lanes, f32 acc.
    u_full = jnp.dot(uwb_ref[...], u_oh, preferred_element_type=jnp.float32)  # (Fp, TB)
    i_full = jnp.dot(iwb_ref[...], i_oh, preferred_element_type=jnp.float32)  # (Fp, TB)

    # sum_f u[f]*i[f] already includes u_bias*1 + 1*i_bias (appended rows);
    # zero-padded rows contribute nothing.
    res = jnp.sum(u_full * i_full, axis=0, keepdims=True)                     # (1, TB)

    if y_range is not None:
        lo, hi = y_range
        # sigmoid(x)*(hi-lo)+lo, written with jnp.exp (guaranteed lowering).
        res = (hi - lo) / (1.0 + jnp.exp(-res)) + lo

    out_ref[...] = res


def prepare_tables(u_weight, i_weight, u_bias, i_bias, table_dtype=jnp.bfloat16):
    """Build fused, transposed, padded tables ONCE (cache per set of weights).

    Returns (uwb, iwb):
      uwb: (Fp, NUp) = [u_weight | u_bias | 1]^T   zero padded, table_dtype
      iwb: (Fp, NIp) = [i_weight | 1 | i_bias]^T   zero padded, table_dtype
    Factor axis on sublanes, entity axis lane-dense; the bias/ones columns
    fold the bias add into the factor reduction.
    """
    f32 = jnp.float32
    u_weight = jnp.asarray(u_weight, f32)
    i_weight = jnp.asarray(i_weight, f32)
    u_bias = jnp.asarray(u_bias, f32).reshape(-1, 1)
    i_bias = jnp.asarray(i_bias, f32).reshape(-1, 1)

    n_users, n_factors = u_weight.shape
    n_items = i_weight.shape[0]

    uwb = jnp.concatenate(
        [u_weight, u_bias, jnp.ones((n_users, 1), f32)], axis=1).T   # (F+2, NU)
    iwb = jnp.concatenate(
        [i_weight, jnp.ones((n_items, 1), f32), i_bias], axis=1).T   # (F+2, NI)

    fp = _round_up(n_factors + 2, 16)          # bf16 sublane packing
    nup = _round_up(n_users, 128)
    nip = _round_up(n_items, 128)
    uwb = jnp.pad(uwb, ((0, fp - (n_factors + 2)), (0, nup - n_users)))
    iwb = jnp.pad(iwb, ((0, fp - (n_factors + 2)), (0, nip - n_items)))
    return uwb.astype(table_dtype), iwb.astype(table_dtype)


def _forward_call(xt, uwb, iwb, *, y_range, tb, grid, b_pad, vmem_limit, cost,
                  single_buffer_tables):
    def table_spec(shape):
        if single_buffer_tables:
            # Constant index_map -> data never changes; single-buffer to halve
            # resident VMEM (matters most on v7x's 64 MiB/TC).
            return pl.BlockSpec(shape, lambda i: (0, 0),
                                pipeline_mode=pl.Buffered(1))
        return pl.BlockSpec(shape, lambda i: (0, 0))

    return pl.pallas_call(
        functools.partial(_edb_kernel, y_range=y_range),
        out_shape=jax.ShapeDtypeStruct((1, b_pad), jnp.float32),
        grid=grid,
        in_specs=[
            pl.BlockSpec((2, tb), lambda i: (0, i)),        # indices, lane-dense
            table_spec(uwb.shape),                          # user table, resident
            table_spec(iwb.shape),                          # item table, resident
        ],
        out_specs=pl.BlockSpec((1, tb), lambda i: (0, i)),  # lane-dense output
        compiler_params=pltpu.CompilerParams(
            dimension_semantics=("parallel",),
            vmem_limit_bytes=vmem_limit,
        ),
        cost_estimate=cost,
    )(xt, uwb, iwb)


def embedding_dot_bias_forward(x, tables, y_range=None, *, batch_tile=256):
    """Pallas-backed forward matching EmbeddingDotBias.forward.

    x: (B, 2) int array of [user_idx, item_idx]; tables from prepare_tables().
    Returns (B,) float32.  Out-of-range indices yield a zero one-hot row
    (prediction 0 / rescaled sigmoid(0)) rather than raising like
    torch.nn.Embedding.
    """
    uwb, iwb = tables
    fp, nup = uwb.shape
    nip = iwb.shape[1]
    itemsize = jnp.dtype(uwb.dtype).itemsize
    B = x.shape[0]

    # TB: multiple of 128 (v5e MXU lane width), default 256 (v6e/v7x 256-wide
    # MXU); shrink for tiny batches but keep >= 2 grid steps for megacore.
    tb = min(batch_tile, max(128, _round_up(max(B, 1), 128)))
    b_pad = max(_round_up(max(B, 1), tb), 2 * tb)
    grid = (b_pad // tb,)

    xt = jnp.pad(jnp.asarray(x, jnp.int32), ((0, b_pad - B), (0, 0))).T  # (2, B_pad)

    cost = pl.CostEstimate(
        flops=int(2 * b_pad * fp * (nup + nip) + 3 * b_pad * fp),
        transcendentals=int(b_pad) if y_range is not None else 0,
        bytes_accessed=int((uwb.size + iwb.size) * itemsize
                           + xt.size * 4 + b_pad * 4),
    )

    # VMEM budget: tables (assume worst-case double-buffered), pipelined
    # index/output tiles, plus per-tile iota / one-hot / matmul intermediates.
    table_bytes = 2 * (uwb.size + iwb.size) * itemsize
    tile_bytes = 2 * (2 * tb * 4 + 1 * tb * 4)
    scratch_bytes = (max(nup, nip) * tb * 4                    # iota
                     + (nup + nip) * tb * (4 + 1 + itemsize)   # slices/bool/bf16 one-hots
                     + 3 * fp * tb * 4)                        # u_full, i_full, product
    needed = table_bytes + tile_bytes + scratch_bytes + (4 << 20)
    vmem_limit = int(min(max(needed, 16 << 20),
                         0.7 * _vmem_capacity_bytes()))

    kwargs = dict(y_range=y_range, tb=tb, grid=grid, b_pad=b_pad,
                  vmem_limit=vmem_limit, cost=cost)
    try:
        out = _forward_call(xt, uwb, iwb, single_buffer_tables=True, **kwargs)
    except Exception:
        # Fallback if this JAX build rejects pipeline_mode / Buffered(1).
        out = _forward_call(xt, uwb, iwb, single_buffer_tables=False, **kwargs)

    return out[0, :B]


def _trunc_normal(key, shape, std=0.01):
    # Matches torch.nn.init.trunc_normal_(std=0.01) closely enough for a
    # deterministic synthetic init.
    return (jax.random.truncated_normal(key, -2.0, 2.0, shape) * std).astype(
        jnp.float32)


def _reference_forward(x, u_weight, i_weight, u_bias, i_bias, y_range=None):
    users, items = x[:, 0], x[:, 1]
    dot = u_weight[users] * i_weight[items]
    res = dot.sum(1) + u_bias[users, 0] + i_bias[items, 0]
    if y_range is None:
        return res
    return jax.nn.sigmoid(res) * (y_range[1] - y_range[0]) + y_range[0]


if __name__ == "__main__":
    n_factors, n_users, n_items, batch = 16, 12, 20, 8

    key = jax.random.PRNGKey(0)
    k_uw, k_iw, k_ub, k_ib, k_u, k_i = jax.random.split(key, 6)

    u_weight = _trunc_normal(k_uw, (n_users, n_factors))
    i_weight = _trunc_normal(k_iw, (n_items, n_factors))
    u_bias = _trunc_normal(k_ub, (n_users, 1))
    i_bias = _trunc_normal(k_ib, (n_items, 1))

    users = jax.random.randint(k_u, (batch,), 0, n_users, dtype=jnp.int32)
    items = jax.random.randint(k_i, (batch,), 0, n_items, dtype=jnp.int32)
    x = jnp.stack([users, items], axis=1)   # (B, 2)

    # Tables are built once (model-init time), not per forward call.
    tables = prepare_tables(u_weight, i_weight, u_bias, i_bias)

    # Reference uses the same bf16-quantized parameters the kernel stores, so
    # we can keep a tight tolerance (the gather/accumulate itself is f32).
    bf = jnp.bfloat16
    uq = u_weight.astype(bf).astype(jnp.float32)
    iq = i_weight.astype(bf).astype(jnp.float32)
    ubq = u_bias.astype(bf).astype(jnp.float32)
    ibq = i_bias.astype(bf).astype(jnp.float32)

    # y_range=None path
    out = embedding_dot_bias_forward(x, tables)
    out = jax.block_until_ready(out)
    ref = _reference_forward(x, uq, iq, ubq, ibq)
    assert out.shape == (batch,)
    assert jnp.allclose(out, ref, atol=1e-4), (out, ref)

    # y_range=(0, 5) path (sigmoid rescale)
    yr = (0.0, 5.0)
    out_r = embedding_dot_bias_forward(x, tables, y_range=yr)
    out_r = jax.block_until_ready(out_r)
    ref_r = _reference_forward(x, uq, iq, ubq, ibq, y_range=yr)
    assert jnp.allclose(out_r, ref_r, atol=1e-4), (out_r, ref_r)

    print("KERNEL_OK")
</pallas_src>

<mosaic_0001>
module attributes {stable_mosaic.version = 11 : i64} {
  func.func @_edb_kernel(%arg0: i32, %arg1: memref<2x128xi32, #tpu.memory_space<vmem>>, %arg2: memref<32x128xbf16, #tpu.memory_space<vmem>>, %arg3: memref<32x128xbf16, #tpu.memory_space<vmem>>, %arg4: memref<1x128xf32, #tpu.memory_space<vmem>>) attributes {dimension_semantics = [#tpu.dimension_semantics<parallel>], iteration_bounds = array<i64: 2>, scalar_prefetch = 0 : i64, scratch_operands = 0 : i64, tpu.core_type = #tpu.core_type<tc>, window_params = [{transform_indices = @transform_0, window_bounds = array<i64: 2, 128>}, {pipeline_mode = #tpu.pipeline_mode<synchronous>, transform_indices = @transform_1, window_bounds = array<i64: 32, 128>}, {pipeline_mode = #tpu.pipeline_mode<synchronous>, transform_indices = @transform_2, window_bounds = array<i64: 32, 128>}, {transform_indices = @transform_3, window_bounds = array<i64: 1, 128>}]} {
    %c0 = arith.constant 0 : index
    %c0_0 = arith.constant 0 : index
    %0 = vector.load %arg1[%c0, %c0_0] : memref<2x128xi32, #tpu.memory_space<vmem>>, vector<1x128xi32>
    %c1 = arith.constant 1 : index
    %c0_1 = arith.constant 0 : index
    %1 = vector.load %arg1[%c1, %c0_1] : memref<2x128xi32, #tpu.memory_space<vmem>>, vector<1x128xi32>
    %2 = tpu.iota {dimensions = array<i32: 0>} : vector<128x128xi32>
    %3 = vector.broadcast %0 : vector<1x128xi32> to vector<128x128xi32>
    %4 = arith.cmpi eq, %2, %3 : vector<128x128xi32>
    %5 = arith.extui %4 : vector<128x128xi1> to vector<128x128xi32>
    %6 = arith.sitofp %5 : vector<128x128xi32> to vector<128x128xf32>
    %7 = arith.truncf %6 : vector<128x128xf32> to vector<128x128xbf16>
    %8 = vector.broadcast %1 : vector<1x128xi32> to vector<128x128xi32>
    %9 = arith.cmpi eq, %2, %8 : vector<128x128xi32>
    %10 = arith.extui %9 : vector<128x128xi1> to vector<128x128xi32>
    %11 = arith.sitofp %10 : vector<128x128xi32> to vector<128x128xf32>
    %12 = arith.truncf %11 : vector<128x128xf32> to vector<128x128xbf16>
    %c0_2 = arith.constant 0 : index
    %c0_3 = arith.constant 0 : index
    %13 = vector.load %arg2[%c0_2, %c0_3] : memref<32x128xbf16, #tpu.memory_space<vmem>>, vector<32x128xbf16>
    %cst = arith.constant dense<0.000000e+00> : vector<32x128xf32>
    %14 = tpu.matmul %13, %7, %cst {dimension_numbers = #tpu.dot_dimension_numbers<[1], [0], [0], [1], [0, 0, 1, 1], [], []>} : vector<32x128xbf16>, vector<128x128xbf16>, vector<32x128xf32> -> vector<32x128xf32>
    %c0_4 = arith.constant 0 : index
    %c0_5 = arith.constant 0 : index
    %15 = vector.load %arg3[%c0_4, %c0_5] : memref<32x128xbf16, #tpu.memory_space<vmem>>, vector<32x128xbf16>
    %cst_6 = arith.constant dense<0.000000e+00> : vector<32x128xf32>
    %16 = tpu.matmul %15, %12, %cst_6 {dimension_numbers = #tpu.dot_dimension_numbers<[1], [0], [0], [1], [0, 0, 1, 1], [], []>} : vector<32x128xbf16>, vector<128x128xbf16>, vector<32x128xf32> -> vector<32x128xf32>
    %17 = arith.mulf %14, %16 : vector<32x128xf32>
    %cst_7 = arith.constant dense<0.000000e+00> : vector<128xf32>
    %18 = vector.multi_reduction <add>, %17, %cst_7 [0] : vector<32x128xf32> to vector<128xf32>
    %19 = vector.shape_cast %18 : vector<128xf32> to vector<1x128xf32>
    %c0_8 = arith.constant 0 : index
    %c0_9 = arith.constant 0 : index
    %20 = vector.load %arg4[%c0_8, %c0_9] : memref<1x128xf32, #tpu.memory_space<vmem>>, vector<1x128xf32>
    tpu.vector_store %arg4[%c0_8, %c0_9], %19 {strides = array<i32>} : memref<1x128xf32, #tpu.memory_space<vmem>>, vector<1x128xf32>,
    return
  }
  func.func @transform_0(%arg0: i32) -> (i32, i32) {
    %c0_i32 = arith.constant 0 : i32
    %c0_i32_0 = arith.constant 0 : i32
    return %c0_i32, %arg0 : i32, i32
  }
  func.func @transform_1(%arg0: i32) -> (i32, i32) {
    %c0_i32 = arith.constant 0 : i32
    %c0_i32_0 = arith.constant 0 : i32
    %c0_i32_1 = arith.constant 0 : i32
    return %c0_i32, %c0_i32_0 : i32, i32
  }
  func.func @transform_2(%arg0: i32) -> (i32, i32) {
    %c0_i32 = arith.constant 0 : i32
    %c0_i32_0 = arith.constant 0 : i32
    %c0_i32_1 = arith.constant 0 : i32
    return %c0_i32, %c0_i32_0 : i32, i32
  }
  func.func @transform_3(%arg0: i32) -> (i32, i32) {
    %c0_i32 = arith.constant 0 : i32
    %c0_i32_0 = arith.constant 0 : i32
    return %c0_i32, %arg0 : i32, i32
  }
}

module attributes {stable_mosaic.version = 11 : i64} {
  func.func @_edb_kernel(%arg0: i32, %arg1: memref<2x128xi32, #tpu.memory_space<vmem>>, %arg2: memref<32x128xbf16, #tpu.memory_space<vmem>>, %arg3: memref<32x128xbf16, #tpu.memory_space<vmem>>, %arg4: memref<1x128xf32, #tpu.memory_space<vmem>>) attributes {dimension_semantics = [#tpu.dimension_semantics<parallel>], iteration_bounds = array<i64: 2>, scalar_prefetch = 0 : i64, scratch_operands = 0 : i64, tpu.core_type = #tpu.core_type<tc>, window_params = [{transform_indices = @transform_0, window_bounds = array<i64: 2, 128>}, {pipeline_mode = #tpu.pipeline_mode<synchronous>, transform_indices = @transform_1, window_bounds = array<i64: 32, 128>}, {pipeline_mode = #tpu.pipeline_mode<synchronous>, transform_indices = @transform_2, window_bounds = array<i64: 32, 128>}, {transform_indices = @transform_3, window_bounds = array<i64: 1, 128>}]} {
    %c0 = arith.constant 0 : index
    %c0_0 = arith.constant 0 : index
    %0 = vector.load %arg1[%c0, %c0_0] : memref<2x128xi32, #tpu.memory_space<vmem>>, vector<1x128xi32>
    %c1 = arith.constant 1 : index
    %c0_1 = arith.constant 0 : index
    %1 = vector.load %arg1[%c1, %c0_1] : memref<2x128xi32, #tpu.memory_space<vmem>>, vector<1x128xi32>
    %2 = tpu.iota {dimensions = array<i32: 0>} : vector<128x128xi32>
    %3 = vector.broadcast %0 : vector<1x128xi32> to vector<128x128xi32>
    %4 = arith.cmpi eq, %2, %3 : vector<128x128xi32>
    %5 = arith.extui %4 : vector<128x128xi1> to vector<128x128xi32>
    %6 = arith.sitofp %5 : vector<128x128xi32> to vector<128x128xf32>
    %7 = arith.truncf %6 : vector<128x128xf32> to vector<128x128xbf16>
    %8 = vector.broadcast %1 : vector<1x128xi32> to vector<128x128xi32>
    %9 = arith.cmpi eq, %2, %8 : vector<128x128xi32>
    %10 = arith.extui %9 : vector<128x128xi1> to vector<128x128xi32>
    %11 = arith.sitofp %10 : vector<128x128xi32> to vector<128x128xf32>
    %12 = arith.truncf %11 : vector<128x128xf32> to vector<128x128xbf16>
    %c0_2 = arith.constant 0 : index
    %c0_3 = arith.constant 0 : index
    %13 = vector.load %arg2[%c0_2, %c0_3] : memref<32x128xbf16, #tpu.memory_space<vmem>>, vector<32x128xbf16>
    %cst = arith.constant dense<0.000000e+00> : vector<32x128xf32>
    %14 = tpu.matmul %13, %7, %cst {dimension_numbers = #tpu.dot_dimension_numbers<[1], [0], [0], [1], [0, 0, 1, 1], [], []>} : vector<32x128xbf16>, vector<128x128xbf16>, vector<32x128xf32> -> vector<32x128xf32>
    %c0_4 = arith.constant 0 : index
    %c0_5 = arith.constant 0 : index
    %15 = vector.load %arg3[%c0_4, %c0_5] : memref<32x128xbf16, #tpu.memory_space<vmem>>, vector<32x128xbf16>
    %cst_6 = arith.constant dense<0.000000e+00> : vector<32x128xf32>
    %16 = tpu.matmul %15, %12, %cst_6 {dimension_numbers = #tpu.dot_dimension_numbers<[1], [0], [0], [1], [0, 0, 1, 1], [], []>} : vector<32x128xbf16>, vector<128x128xbf16>, vector<32x128xf32> -> vector<32x128xf32>
    %17 = arith.mulf %14, %16 : vector<32x128xf32>
    %cst_7 = arith.constant dense<0.000000e+00> : vector<128xf32>
    %18 = vector.multi_reduction <add>, %17, %cst_7 [0] : vector<32x128xf32> to vector<128xf32>
    %19 = vector.shape_cast %18 : vector<128xf32> to vector<1x128xf32>
    %c0_8 = arith.constant 0 : index
    %c0_9 = arith.constant 0 : index
    %20 = vector.load %arg4[%c0_8, %c0_9] : memref<1x128xf32, #tpu.memory_space<vmem>>, vector<1x128xf32>
    tpu.vector_store %arg4[%c0_8, %c0_9], %19 {strides = array<i32>} : memref<1x128xf32, #tpu.memory_space<vmem>>, vector<1x128xf32>,
    return
  }
  func.func @transform_0(%arg0: i32) -> (i32, i32) {
    %c0_i32 = arith.constant 0 : i32
    %c0_i32_0 = arith.constant 0 : i32
    return %c0_i32, %arg0 : i32, i32
  }
  func.func @transform_1(%arg0: i32) -> (i32, i32) {
    %c0_i32 = arith.constant 0 : i32
    %c0_i32_0 = arith.constant 0 : i32
    %c0_i32_1 = arith.constant 0 : i32
    return %c0_i32, %c0_i32_0 : i32, i32
  }
  func.func @transform_2(%arg0: i32) -> (i32, i32) {
    %c0_i32 = arith.constant 0 : i32
    %c0_i32_0 = arith.constant 0 : i32
    %c0_i32_1 = arith.constant 0 : i32
    return %c0_i32, %c0_i32_0 : i32, i32
  }
  func.func @transform_3(%arg0: i32) -> (i32, i32) {
    %c0_i32 = arith.constant 0 : i32
    %c0_i32_0 = arith.constant 0 : i32
    return %c0_i32, %arg0 : i32, i32
  }
}

</mosaic_0001>

<bundles_post_ra>
// kernel: tpu_custom_call.1
= control target key start
LH: loop header
LB: loop body
LE: loop exit
PB: predicated region body
PF: predicated region fallthrough
CT: control target
= control target key end

     0   :  { %8 = vsyncpa [#allocation3], 0  ;;  %s1304_s0 = inlined_call_operand.hbm [shape: s32[2,256], index: 0, kind: input, shape index: {}]   ;;  %s1305_s1 = inlined_call_operand.hbm [shape: bf16[32,128], index: 1, kind: input, shape index: {}]   ;;  %s1306_s2 = inlined_call_operand.hbm [shape: bf16[32,128], index: 2, kind: input, shape index: {}]   ;;  %s1307_s3 = inlined_call_operand.hbm [shape: f32[1,256], index: 3, kind: output, shape index: {}]  }
   0x1   :  { %10 = vsyncpa [#allocation3 + $0x1], 0 }
   0x2   :  { %11 = vsyncpa [#allocation6], 0 }
   0x3   :  { %12 = vsyncpa [#allocation4], 0 }
   0x4   :  { %14 = vsyncpa [#allocation4 + $0x1], 0  ;;  %s991_s12 = smov 0   ;;  %s993_s13 = smov 0  }
   0x5   :  { %s995_s14 = smov 0   ;;  %s997_s15 = smov 0  }
   0x6 LB: > { %s1012_s16 = sadd.s32 4294967295, %s962_s15   ;;  %s596_s17 = sadd.s32 4294967294, %s962_s15   ;;  %s962_s15 = sphi %s997_s15, %s1343_s15   ;;  %s958_s14 = sphi %s995_s14, %s1342_s14   ;;  %s954_s13 = sphi %s993_s13, %s1341_s13   ;;  %s950_s12 = sphi %s991_s12, %s1340_s12  }
   0x7   : > { %p40_p0 = scmp.ne.s32.totalorder %s954_s13, %s950_s12  ;;  %p1308_p1 = scmp.eq.s32.totalorder %s1012_s16, 0 }
   0x8   : > { %p112_p3 = scmp.eq.s32.totalorder %s596_s17, 1  ;;  %p597_p5 = scmp.ge.s32.totalorder %s962_s15, 1 }
   0x9   : > { %p1021_p4 = por %p1308_p1, %p40_p0  ;;  %p119_p7 = scmp.lt.s32.totalorder %s962_s15, 3 }
   0xa   : > { %p1026_p6 = por %p112_p3, %p40_p0  ;;  %s964_s21 = smov [#allocation5]  }
   0xb   : > { %s1312_s18 = scalar_select %p1021_p4, 1, 0 }
   0xc   : > { %s1313_s19 = scalar_select %p1026_p6, 1, 0 }
   0xd   : > { %p1031_p8 = pnand %p597_p5, %p119_p7  ;;  %s131_s22 = sshll.u32 %s964_s21, 4  ;;  %s132_s22 = int_to_ptr.vmem [resolvable:$true] %s131_s22 }
   0xe   : > { %s965_s24 = smov [#allocation7]   ;;  %s825_s26 = scalar_lea.vmem %s132_s22, 256 }
   0xf   : > { %s1314_s20 = scalar_select %p1031_p8, 1, 0 }
  0x10   : > { %p752_p9 = pneg %p1031_p8  ;;  %s144_s25 = sshll.u32 %s965_s24, 4  ;;  %s145_s25 = int_to_ptr.vmem [resolvable:$true] %s144_s25 }
  0x11   : > { %p826_p13 = scmp.ne.s32.totalorder %s132_s22, %s825_s26  ;;  %p833_p5 = scmp.lt.s32.totalorder %s132_s22, %s132_s22 }
  0x12   : > { %p1040_p11 = pnand %p752_p9, %p1308_p1  ;;  %p834_p7 = scmp.lt.s32.totalorder %s825_s26, %s825_s26 }
  0x14   : > { %p816_p12 = pneg %p1040_p11  ;;  %p835_p10 = por %p834_p7, %p833_p5 }
  0x16   : > { %p828_p0 = pnand %p826_p13, %p816_p12 }
  0x18   : > { %p829_p3 = pneg %p828_p0 }
  0x1a   : > { %p836_p9 = pnand %p835_p10, %p829_p3 }
  0x1c   : > { %839 = shalt.err (!%p836_p9)
}
  0x1d   : > { %s966_s27 = smov 64   ;;  %s967_s28 = smov 4  }
  0x1e   : > { %755 = dma.hbm_to_vmem [thread:$0]  (!%p1040_p11), %s1305_s1, 256, %s132_s22, [#allocation6], %s966_s27, %s966_s27, %s967_s28  }
  0x1f   : > { %s851_s4 = scalar_lea.vmem %s145_s25, 256  ;;  %p859_p2 = scmp.lt.s32.totalorder %s145_s25, %s145_s25 }
  0x20   : > { %p852_p1 = scmp.ne.s32.totalorder %s145_s25, %s851_s4  ;;  %p860_p6 = scmp.lt.s32.totalorder %s851_s4, %s851_s4 }
  0x22   : > { %p854_p13 = pnand %p852_p1, %p816_p12  ;;  %p861_p5 = por %p860_p6, %p859_p2 }
  0x24   : > { %p855_p0 = pneg %p854_p13 }
  0x26   : > { %p862_p10 = pnand %p861_p5, %p855_p0 }
  0x28   : > { %865 = shalt.err (!%p862_p10)
}
  0x29   : > { %758 = dma.hbm_to_vmem [thread:$0]  (!%p1040_p11), %s1306_s2, 256, %s145_s25, [#allocation6], %s966_s27, %s966_s27, %s967_s28  }
  0x2a   : > { %s1063_s7 = sadd.s32 1, %s962_s15   ;;  %s27_s8 = sadd.s32 1, %s958_s14 }
  0x2b   : > { %s24_s9 = ssub.s32 %s962_s15, %s1063_s7  ;;  %p34_p1 = scmp.ne.s32.totalorder %s958_s14, %s954_s13 }
  0x2c   : > { %p25_p2 = scmp.eq.s32.totalorder %s24_s9, 0  ;;  %p35_p6 = scmp.eq.s32.totalorder %s962_s15, 0 }
  0x2d   : > { %p1316_p12 = scmp.eq.s32.totalorder %s1012_s16, 1  ;;  %p769_p7 = scmp.lt.s32.totalorder %s962_s15, 2 }
  0x2e   : > { %s1079_s11 = scalar_select %p25_p2, %s958_s14, %s27_s8  }
  0x2f   : > { %p1073_p3 = por %p1316_p12, %p34_p1  ;;  %p36_p9 = por %p35_p6, %p34_p1 }
  0x30   : > { %s158_s17 = sand.u32 1, %s958_s14   ;;  %s602_s22 = sshll.u32 %s962_s15, 5 }
  0x31   : > { %s1317_s10 = scalar_select %p1073_p3, 1, 0 }
  0x32   : > { %s601_s21 = sshll.u32 %s158_s17, 1  ;;  %s1086_s25 = scalar_lea.hbm %s1304_s0, %s602_s22 }
  0x33   : > { %s162_s26 = scalar_lea.vmem [#allocation2], %s601_s21  ;;  %p1088_p11 = pnand %p769_p7, %p36_p9 }
  0x34   : > { %s169_s27 = sshll.u32 %s162_s26, 4  ;;  %s159_s29 = scalar_lea.sflag [#allocation3], %s158_s17  ;;  %s170_s27 = int_to_ptr.vmem [resolvable:$true] %s169_s27 }
  0x35   : > { %s866_s30 = scalar_lea.hbm %s1086_s25, 32  ;;  %p868_p0 = pneg %p1088_p11 }
  0x36   : > { %p867_p13 = scmp.ne.s32.totalorder %s1086_s25, %s866_s30  ;;  %s871_s6 = scalar_lea.hbm %s1304_s0, 64 }
  0x37   : > { %p872_p1 = scmp.lt.s32.totalorder %s1086_s25, %s1304_s0  ;;  %p873_p2 = scmp.lt.s32.totalorder %s871_s6, %s866_s30 }
  0x38   : > { %p869_p5 = pnand %p868_p0, %p867_p13 }
  0x39   : > { %p874_p6 = por %p873_p2, %p872_p1 }
  0x3a   : > { %p870_p10 = pneg %p869_p5 }
  0x3c   : > { %p875_p12 = pnand %p874_p6, %p870_p10 }
  0x3e   : > { %878 = shalt.err (!%p875_p12)
}
  0x3f   : > { %s879_s21 = scalar_lea.vmem %s170_s27, 32  ;;  %s968_s17 = smov [#allocation2]  }
  0x40   : > { %p880_p7 = scmp.ne.s32.totalorder %s170_s27, %s879_s21  ;;  %s884_s22 = sshll.u32 %s968_s17, 4  ;;  %s885_s22 = int_to_ptr.vmem [resolvable:$false] %s884_s22 }
  0x41   : > { %s886_s23 = scalar_lea.vmem %s885_s22, 64  ;;  %p887_p13 = scmp.lt.s32.totalorder %s170_s27, %s885_s22 }
  0x42   : > { %p882_p9 = pnand %p880_p7, %p868_p0  ;;  %p888_p5 = scmp.lt.s32.totalorder %s886_s23, %s879_s21 }
  0x44   : > { %p883_p3 = pneg %p882_p9  ;;  %p889_p4 = por %p888_p5, %p887_p13 }
  0x46   : > { %p890_p8 = pnand %p889_p4, %p883_p3 }
  0x48   : > { %893 = shalt.err (!%p890_p8)
}
  0x49   : > { %762 = dma.hbm_to_vmem [thread:$0]  (!%p1088_p11), %s1086_s25, 32, %s170_s27, %s159_s29  }
  0x4a   : > { %p1319_p10 = scmp.ne.s32.totalorder %s1314_s20, 0 }
  0x4b   : > { %s1109_s24 = sand.u32 (!%p1319_p10), 1, %s954_s13   ;;  %p1320_p0 = scmp.ne.s32.totalorder (!%p1319_p10), %s1312_s18, 0 }
  0x4c   : > { %178 = sbr.rel (%p1319_p10) target bundleno = 358 (0x166), region = 32  ;;  %s604_s26 = sshll.u32 (!%p1319_p10), %s1109_s24, 1 }
  0x4d   : > { %s181_s30 = scalar_lea.sflag (!%p1319_p10), [#allocation3], %s1109_s24  ;;  %s184_s4 = scalar_lea.vmem (!%p1319_p10), [#allocation2], %s604_s26 }
  0x51   : > { %937 = dma.done.wait (%p1320_p0), %s181_s30, 32  }
  0x52   : > { %939 = vsyncadd (%p1320_p0), %s181_s30, 4294967264  ;;  %p1321_p4 = scmp.eq.s32.totalorder %s1012_s16, 0 }
  0x54   : > { %941 = dma.done.wait (%p1321_p4), [#allocation6], 512   ;;  %p1322_p8 = pmov %p1321_p4 }
  0x55   : > { %v217_v0 = vlaneseq  ;;  %v1129_v8 = vld [vmem:[%s184_s4] ss:$0 sm:$0xff]  ;;  %v1131_v9 = vld [vmem:[%s184_s4 + $0x1] ss:$0 sm:$0xff]  ;;  %v969_v10 = vmov 1.0|1.0  }
  0x56   : > { %943 = vsyncadd (%p1322_p8), [#allocation6], 4294966784  ;;  %v810_v13 = vld [vmem:[#allocation5] sm:$0xff]   ;;  %v811_v15 = vld [vmem:[#allocation7] sm:$0xff]   ;;  %s677_s18 = sshll.u32 %s1012_s16, 4  ;;  %s213_s20 = scalar_lea.vmem [#allocation8], %s1109_s24 }
  0x57   : > { %v1121_v1 = vshrl.u32 %v217_v0, 7  ;;  %716 = vmatprep.mubr.bf16.mxu0 %v810_v13  ;;  %736 = vmatprep.mubr.bf16.mxu1 %v811_v15  ;;  %v812_v29 = vld [vmem:[#allocation5 + $0x8] sm:$0xff]   ;;  %v813_v30 = vld [vmem:[#allocation7 + $0x8] sm:$0xff]   ;;  %s511_s25 = sshll.u32 %s213_s20, 4  ;;  %s509_s29 = scalar_lea.hbm %s1307_s3, %s677_s18  ;;  %s512_s25 = int_to_ptr.vmem [resolvable:$true] %s511_s25 }
  0x58   : > { %s499_s5 = scalar_lea.sflag [#allocation4], %s1109_s24  ;;  %s894_s6 = scalar_lea.vmem %s512_s25, 16 }
  0x59   : > { %v232_v2 = vadd.s32 112, %v1121_v1  ;;  %v233_v3 = vadd.s32 120, %v1121_v1  ;;  %v230_v4 = vadd.s32 96, %v1121_v1  ;;  %v231_v5 = vadd.s32 104, %v1121_v1  ;;  %p895_p3 = scmp.ne.s32.totalorder %s512_s25, %s894_s6  ;;  %p1337_p11 = scmp.ne.s32.totalorder %s1317_s10, 0 }
  0x5a   : > { %v228_v6 = vadd.s32 80, %v1121_v1  ;;  %v229_v7 = vadd.s32 88, %v1121_v1  ;;  %v226_v11 = vadd.s32 64, %v1121_v1  ;;  %v227_v12 = vadd.s32 72, %v1121_v1  ;;  %s970_s8 = smov [#allocation8]  }
  0x5b   : > { %vm252_vm0 = vcmp.eq.s32.totalorder %v232_v2, %v1129_v8  ;;  %vm253_vm1 = vcmp.eq.s32.totalorder %v233_v3, %v1129_v8  ;;  %vm312_vm2 = vcmp.eq.s32.totalorder %v232_v2, %v1131_v9  ;;  %vm313_vm3 = vcmp.eq.s32.totalorder %v233_v3, %v1131_v9  ;;  %p896_p1 = pnand %p895_p3, %p1337_p11  ;;  %s898_s9 = sshll.u32 %s970_s8, 4  ;;  %s899_s9 = int_to_ptr.vmem [resolvable:$false] %s898_s9 }
  0x5c   : > { %vm643_vm4 = vmpackc.low %vm253_vm1, %vm252_vm0  ;;  %vm250_vm5 = vcmp.eq.s32.totalorder %v230_v4, %v1129_v8  ;;  %vm251_vm6 = vcmp.eq.s32.totalorder %v231_v5, %v1129_v8  ;;  %vm310_vm7 = vcmp.eq.s32.totalorder %v230_v4, %v1131_v9  ;;  %vm311_vm8 = vcmp.eq.s32.totalorder %v231_v5, %v1131_v9  ;;  %s900_s16 = scalar_lea.vmem %s899_s9, 32  ;;  %p901_p6 = scmp.lt.s32.totalorder %s512_s25, %s899_s9 }
  0x5d   : > { %700 = vmatprep.subr.msk.bf16.mxu0 %vm643_vm4, %v969_v10  ;;  %vm661_vm9 = vmpackc.low %vm313_vm3, %vm312_vm2  ;;  %vm248_vm10 = vcmp.eq.s32.totalorder %v228_v6, %v1129_v8  ;;  %vm249_vm11 = vcmp.eq.s32.totalorder %v229_v7, %v1129_v8  ;;  %vm308_vm13 = vcmp.eq.s32.totalorder %v228_v6, %v1131_v9  ;;  %vm309_vm14 = vcmp.eq.s32.totalorder %v229_v7, %v1131_v9  ;;  %p897_p2 = pneg %p896_p1  ;;  %p902_p12 = scmp.lt.s32.totalorder %s900_s16, %s894_s6 }
  0x5e   : > { %720 = vmatprep.subr.msk.bf16.mxu1 %vm661_vm9, %v969_v10  ;;  %701 = vmatpush3.bf16.msk.msra.mxu0 %vm643_vm4, %v969_v10  ;;  %vm645_vm12 = vmpackc.low %vm251_vm6, %vm250_vm5  ;;  %vm246_vm2 = vcmp.eq.s32.totalorder %v226_v11, %v1129_v8  ;;  %vm247_vm3 = vcmp.eq.s32.totalorder %v227_v12, %v1129_v8  ;;  %v224_v17 = vadd.s32 48, %v1121_v1  ;;  %v225_v18 = vadd.s32 56, %v1121_v1 }
  0x5f   : > { %721 = vmatpush3.bf16.msk.msra.mxu1 %vm661_vm9, %v969_v10  ;;  %702 = vmatprep.subr.msk.bf16.mxu0 %vm645_vm12, %v969_v10  ;;  %vm663_vm15 = vmpackc.low %vm311_vm8, %vm310_vm7  ;;  %vm306_vm4 = vcmp.eq.s32.totalorder %v226_v11, %v1131_v9  ;;  %vm307_vm5 = vcmp.eq.s32.totalorder %v227_v12, %v1131_v9  ;;  %v222_v21 = vadd.s32 32, %v1121_v1  ;;  %v223_v22 = vadd.s32 40, %v1121_v1  ;;  %p903_p7 = por %p902_p12, %p901_p6 }
  0x60   : > { %722 = vmatprep.subr.msk.bf16.mxu1 %vm663_vm15, %v969_v10  ;;  %vm1157_vm0 = vmpackc.low %vm249_vm11, %vm248_vm10  ;;  %vm244_vm8 = vcmp.eq.s32.totalorder %v224_v17, %v1129_v8  ;;  %vm245_vm9 = vcmp.eq.s32.totalorder %v225_v18, %v1129_v8  ;;  %vm304_vm10 = vcmp.eq.s32.totalorder %v224_v17, %v1131_v9  ;;  %vm305_vm11 = vcmp.eq.s32.totalorder %v225_v18, %v1131_v9 }
  0x61   : > { %vm1161_vm1 = vmpackc.low %vm309_vm14, %vm308_vm13  ;;  %vm242_vm14 = vcmp.eq.s32.totalorder %v222_v21, %v1129_v8  ;;  %v220_v25 = vadd.s32 16, %v1121_v1  ;;  %v221_v26 = vadd.s32 24, %v1121_v1  ;;  %v219_v28 = vadd.s32 8, %v1121_v1  ;;  %p904_p9 = pnand %p903_p7, %p897_p2 }
  0x62   : > { %703 = vmatpush3.bf16.msk.msra.mxu0 %vm645_vm12, %v969_v10  ;;  %vm1179_vm6 = vmpackc.low %vm247_vm3, %vm246_vm2 }
  0x63   : > { %723 = vmatpush3.bf16.msk.msra.mxu1 %vm663_vm15, %v969_v10  ;;  %704 = vmatprep.subr.msk.bf16.mxu0 %vm1157_vm0, %v969_v10  ;;  %vm1183_vm7 = vmpackc.low %vm307_vm5, %vm306_vm4  ;;  %vm243_vm15 = vcmp.eq.s32.totalorder %v223_v22, %v1129_v8  ;;  %vm240_vm4 = vcmp.eq.s32.totalorder %v220_v25, %v1129_v8  ;;  %vm241_vm5 = vcmp.eq.s32.totalorder %v221_v26, %v1129_v8 }
  0x64   : > { %724 = vmatprep.subr.msk.bf16.mxu1 %vm1161_vm1, %v969_v10  ;;  %vm1205_vm12 = vmpackc.low %vm245_vm9, %vm244_vm8 }
  0x65   : > { %vm1209_vm13 = vmpackc.low %vm305_vm11, %vm304_vm10  ;;  %vm238_vm10 = vcmp.eq.s32.totalorder %v1121_v1, %v1129_v8  ;;  %vm239_vm11 = vcmp.eq.s32.totalorder %v219_v28, %v1129_v8 }
  0x66   : > { %705 = vmatpush3.bf16.msk.msra.mxu0 %vm1157_vm0, %v969_v10  ;;  %vm302_vm0 = vcmp.eq.s32.totalorder %v222_v21, %v1131_v9  ;;  %vm653_vm2 = vmpackc.low %vm243_vm15, %vm242_vm14 }
  0x67   : > { %725 = vmatpush3.bf16.msk.msra.mxu1 %vm1161_vm1, %v969_v10  ;;  %706 = vmatprep.subr.msk.bf16.mxu0 %vm1179_vm6, %v969_v10  ;;  %vm303_vm1 = vcmp.eq.s32.totalorder %v223_v22, %v1131_v9  ;;  %vm655_vm8 = vmpackc.low %vm241_vm5, %vm240_vm4 }
  0x68   : > { %726 = vmatprep.subr.msk.bf16.mxu1 %vm1183_vm7, %v969_v10  ;;  %vm1231_vm3 = vmpackc.low %vm303_vm1, %vm302_vm0 }
  0x69   : > { %vm657_vm14 = vmpackc.low %vm239_vm11, %vm238_vm10 }
  0x6a   : > { %707 = vmatpush3.bf16.msk.msra.mxu0 %vm1179_vm6, %v969_v10  ;;  %vm300_vm6 = vcmp.eq.s32.totalorder %v220_v25, %v1131_v9 }
  0x6b   : > { %727 = vmatpush3.bf16.msk.msra.mxu1 %vm1183_vm7, %v969_v10  ;;  %708 = vmatprep.subr.msk.bf16.mxu0 %vm1205_vm12, %v969_v10  ;;  %vm301_vm7 = vcmp.eq.s32.totalorder %v221_v26, %v1131_v9 }
  0x6c   : > { %728 = vmatprep.subr.msk.bf16.mxu1 %vm1209_vm13, %v969_v10  ;;  %vm673_vm9 = vmpackc.low %vm301_vm7, %vm300_vm6 }
  0x6e   : > { %709 = vmatpush3.bf16.msk.msra.mxu0 %vm1205_vm12, %v969_v10  ;;  %vm298_vm12 = vcmp.eq.s32.totalorder %v1121_v1, %v1131_v9 }
  0x6f   : > { %729 = vmatpush3.bf16.msk.msra.mxu1 %vm1209_vm13, %v969_v10  ;;  %710 = vmatprep.subr.msk.bf16.mxu0 %vm653_vm2, %v969_v10  ;;  %vm299_vm13 = vcmp.eq.s32.totalorder %v219_v28, %v1131_v9 }
  0x70   : > { %730 = vmatprep.subr.msk.bf16.mxu1 %vm1231_vm3, %v969_v10  ;;  %vm675_vm15 = vmpackc.low %vm299_vm13, %vm298_vm12 }
  0x72   : > { %711 = vmatpush3.bf16.msk.msra.mxu0 %vm653_vm2, %v969_v10 }
  0x73   : > { %731 = vmatpush3.bf16.msk.msra.mxu1 %vm1231_vm3, %v969_v10  ;;  %712 = vmatprep.subr.msk.bf16.mxu0 %vm655_vm8, %v969_v10 }
  0x74   : > { %732 = vmatprep.subr.msk.bf16.mxu1 %vm673_vm9, %v969_v10 }
  0x76   : > { %713 = vmatpush3.bf16.msk.msra.mxu0 %vm655_vm8, %v969_v10 }
  0x77   : > { %733 = vmatpush3.bf16.msk.msra.mxu1 %vm673_vm9, %v969_v10  ;;  %714 = vmatprep.subr.msk.bf16.mxu0 %vm657_vm14, %v969_v10 }
  0x78   : > { %734 = vmatprep.subr.msk.bf16.mxu1 %vm675_vm15, %v969_v10 }
  0x7a   : > { %715 = vmatpush3.bf16.msk.msra.mxu0 %vm657_vm14, %v969_v10 }
  0x7b   : > { %735 = vmatpush3.bf16.msk.msra.mxu1 %vm675_vm15, %v969_v10 }
  0x7d   : > { %717 = vmatmul.mubr.bf16.vlgmr.msra.gmra.mxu0 %v812_v29 }
  0x7e   : > { %737 = vmatmul.mubr.bf16.vlgmr.msra.gmra.mxu1 %v813_v30 }
 0x13d   : > { %v718_v31 = vpop.f32.mrf.mxu0 }
 0x13e   : > { %v738_v32 = vpop.f32.mrf.mxu1 }
 0x13f   : > { %v404_v33 = vpop.f32.mrf.mxu0  ;;  %v486_v41 = vmul.f32 %v738_v32, %v718_v31 }
 0x140   : > { %v469_v34 = vpop.f32.mrf.mxu1 }
 0x141   : > { %v719_v35 = vpop.f32.mrf.mxu0  ;;  %v484_v39 = vmul.f32 %v469_v34, %v404_v33 }
 0x142   : > { %v739_v36 = vpop.f32.mrf.mxu1 }
 0x143   : > { %v407_v37 = vpop.f32.mrf.mxu0  ;;  %v487_v43 = vmul.f32 %v739_v36, %v719_v35 }
 0x144   : > { %v472_v38 = vpop.f32.mrf.mxu1 }
 0x145   : > { %v485_v40 = vmul.f32 %v472_v38, %v407_v37 }
 0x147   : > { %v488_v42 = vadd.f32 %v485_v40, %v484_v39 }
 0x149   : > { %v489_v44 = vadd.f32 %v488_v42, %v486_v41 }
 0x14b   : > { %v490_v45 = vadd.f32 %v489_v44, %v487_v43 }
 0x14d   : > { %v491_v46 = vrot.slane %v490_v45, 4 }
 0x14f   : > { %v492_v47 = vadd.f32 %v491_v46, %v490_v45 }
 0x151   : > { %v493_v48 = vrot.slane %v492_v47, 2 }
 0x153   : > { %v494_v49 = vadd.f32 %v493_v48, %v492_v47 }
 0x155   : > { %v495_v50 = vrot.slane %v494_v49, 1 }
 0x157   : > { %v496_v51 = vadd.f32 %v495_v50, %v494_v49 }
 0x159   : > { %497 = vst [vmem:[%s213_s20] sm:$0x1] %v496_v51 }
 0x15a   : > { %907 = shalt.err (!%p904_p9)
}
 0x15b   : > { %s908_s21 = scalar_lea.hbm %s509_s29, 16  ;;  %s912_s23 = scalar_lea.hbm %s1307_s3, 32 }
 0x15c   : > { %p909_p13 = scmp.ne.s32.totalorder %s509_s29, %s908_s21  ;;  %p913_p0 = scmp.lt.s32.totalorder %s509_s29, %s1307_s3 }
 0x15d   : > { %p914_p4 = scmp.lt.s32.totalorder %s912_s23, %s908_s21 }
 0x15e   : > { %p910_p5 = pnand %p909_p13, %p1337_p11 }
 0x15f   : > { %p915_p8 = por %p914_p4, %p913_p0 }
 0x160   : > { %p911_p10 = pneg %p910_p5 }
 0x162   : > { %p916_p3 = pnand %p915_p8, %p911_p10 }
 0x164   : > { %919 = shalt.err (!%p916_p3)
}
 0x165   : > { %750 = dma.vmem_to_hbm [thread:$0]  (%p1337_p11), %s512_s25, 16, %s509_s29, %s499_s5  }
 0x166 PF: > { %s523_s30 = sand.u32 1, %s950_s12   ;;  %p1338_p1 = scmp.ne.s32.totalorder %s1313_s19, 0 }
 0x167   : > { %p1339_p2 = scmp.ge.s32.totalorder %s962_s15, 2  ;;  %s524_s4 = scalar_lea.sflag [#allocation4], %s523_s30 }
 0x169   : > { %p764_p6 = pnand %p1339_p2, %p1338_p1 }
 0x16b   : > { %p765_p12 = pneg %p764_p6 }
 0x16d   : > { %945 = dma.done.wait (%p765_p12), %s524_s4, 16  }
 0x16e   : > { %947 = vsyncadd (%p765_p12), %s524_s4, 4294967280  ;;  %p17_p7 = scmp.ge.s32.totalorder %s1063_s7, 4   ;;  %s1340_s12 = smov %s954_s13 }
 0x16f   : > { %s1341_s13 = smov %s958_s14  ;;  %s1342_s14 = smov %s1079_s11 }
 0x170   : > { %s1343_s15 = smov %s1063_s7  ;;  %19 = sbr.rel (!%p17_p7) target bundleno = 6 (0x6), region = 85 }
 0x175   :  { %528 = vsyncpa [#allocation3], 1 }
 0x176   :  { %530 = vsyncpa [#allocation3 + $0x1], 1 }
 0x177   :  { %531 = vsyncpa [#allocation6], 1 }
 0x178   :  { %532 = vsyncpa [#allocation4], 1 }
 0x179   :  { %534 = vsyncpa [#allocation4 + $0x1], 1 }

// kernel: tpu_custom_call.1
= control target key start
LH: loop header
LB: loop body
LE: loop exit
PB: predicated region body
PF: predicated region fallthrough
CT: control target
= control target key end

     0   :  { %8 = vsyncpa [#allocation3], 0  ;;  %s1304_s0 = inlined_call_operand.hbm [shape: s32[2,256], index: 0, kind: input, shape index: {}]   ;;  %s1305_s1 = inlined_call_operand.hbm [shape: bf16[32,128], index: 1, kind: input, shape index: {}]   ;;  %s1306_s2 = inlined_call_operand.hbm [shape: bf16[32,128], index: 2, kind: input, shape index: {}]   ;;  %s1307_s3 = inlined_call_operand.hbm [shape: f32[1,256], index: 3, kind: output, shape index: {}]  }
   0x1   :  { %10 = vsyncpa [#allocation3 + $0x1], 0 }
   0x2   :  { %11 = vsyncpa [#allocation6], 0 }
   0x3   :  { %12 = vsyncpa [#allocation4], 0 }
   0x4   :  { %14 = vsyncpa [#allocation4 + $0x1], 0  ;;  %s991_s12 = smov 0   ;;  %s993_s13 = smov 0  }
   0x5   :  { %s995_s14 = smov 0   ;;  %s997_s15 = smov 0  }
   0x6 LB: > { %s1012_s16 = sadd.s32 4294967295, %s962_s15   ;;  %s596_s17 = sadd.s32 4294967294, %s962_s15   ;;  %s962_s15 = sphi %s997_s15, %s1343_s15   ;;  %s958_s14 = sphi %s995_s14, %s1342_s14   ;;  %s954_s13 = sphi %s993_s13, %s1341_s13   ;;  %s950_s12 = sphi %s991_s12, %s1340_s12  }
   0x7   : > { %p40_p0 = scmp.ne.s32.totalorder %s954_s13, %s950_s12  ;;  %p1308_p1 = scmp.eq.s32.totalorder %s1012_s16, 0 }
   0x8   : > { %p112_p3 = scmp.eq.s32.totalorder %s596_s17, 1  ;;  %p597_p5 = scmp.ge.s32.totalorder %s962_s15, 1 }
   0x9   : > { %p1021_p4 = por %p1308_p1, %p40_p0  ;;  %p119_p7 = scmp.lt.s32.totalorder %s962_s15, 3 }
   0xa   : > { %p1026_p6 = por %p112_p3, %p40_p0  ;;  %s964_s21 = smov [#allocation5]  }
   0xb   : > { %s1312_s18 = scalar_select %p1021_p4, 1, 0 }
   0xc   : > { %s1313_s19 = scalar_select %p1026_p6, 1, 0 }
   0xd   : > { %p1031_p8 = pnand %p597_p5, %p119_p7  ;;  %s131_s22 = sshll.u32 %s964_s21, 4  ;;  %s132_s22 = int_to_ptr.vmem [resolvable:$true] %s131_s22 }
   0xe   : > { %s965_s24 = smov [#allocation7]   ;;  %s825_s26 = scalar_lea.vmem %s132_s22, 256 }
   0xf   : > { %s1314_s20 = scalar_select %p1031_p8, 1, 0 }
  0x10   : > { %p752_p9 = pneg %p1031_p8  ;;  %s144_s25 = sshll.u32 %s965_s24, 4  ;;  %s145_s25 = int_to_ptr.vmem [resolvable:$true] %s144_s25 }
  0x11   : > { %p826_p13 = scmp.ne.s32.totalorder %s132_s22, %s825_s26  ;;  %p833_p5 = scmp.lt.s32.totalorder %s132_s22, %s132_s22 }
  0x12   : > { %p1040_p11 = pnand %p752_p9, %p1308_p1  ;;  %p834_p7 = scmp.lt.s32.totalorder %s825_s26, %s825_s26 }
  0x14   : > { %p816_p12 = pneg %p1040_p11  ;;  %p835_p10 = por %p834_p7, %p833_p5 }
  0x16   : > { %p828_p0 = pnand %p826_p13, %p816_p12 }
  0x18   : > { %p829_p3 = pneg %p828_p0 }
  0x1a   : > { %p836_p9 = pnand %p835_p10, %p829_p3 }
  0x1c   : > { %839 = shalt.err (!%p836_p9)
}
  0x1d   : > { %s966_s27 = smov 64   ;;  %s967_s28 = smov 4  }
  0x1e   : > { %755 = dma.hbm_to_vmem [thread:$0]  (!%p1040_p11), %s1305_s1, 256, %s132_s22, [#allocation6], %s966_s27, %s966_s27, %s967_s28  }
  0x1f   : > { %s851_s4 = scalar_lea.vmem %s145_s25, 256  ;;  %p859_p2 = scmp.lt.s32.totalorder %s145_s25, %s145_s25 }
  0x20   : > { %p852_p1 = scmp.ne.s32.totalorder %s145_s25, %s851_s4  ;;  %p860_p6 = scmp.lt.s32.totalorder %s851_s4, %s851_s4 }
  0x22   : > { %p854_p13 = pnand %p852_p1, %p816_p12  ;;  %p861_p5 = por %p860_p6, %p859_p2 }
  0x24   : > { %p855_p0 = pneg %p854_p13 }
  0x26   : > { %p862_p10 = pnand %p861_p5, %p855_p0 }
  0x28   : > { %865 = shalt.err (!%p862_p10)
}
  0x29   : > { %758 = dma.hbm_to_vmem [thread:$0]  (!%p1040_p11), %s1306_s2, 256, %s145_s25, [#allocation6], %s966_s27, %s966_s27, %s967_s28  }
  0x2a   : > { %s1063_s7 = sadd.s32 1, %s962_s15   ;;  %s27_s8 = sadd.s32 1, %s958_s14 }
  0x2b   : > { %s24_s9 = ssub.s32 %s962_s15, %s1063_s7  ;;  %p34_p1 = scmp.ne.s32.totalorder %s958_s14, %s954_s13 }
  0x2c   : > { %p25_p2 = scmp.eq.s32.totalorder %s24_s9, 0  ;;  %p35_p6 = scmp.eq.s32.totalorder %s962_s15, 0 }
  0x2d   : > { %p1316_p12 = scmp.eq.s32.totalorder %s1012_s16, 1  ;;  %p769_p7 = scmp.lt.s32.totalorder %s962_s15, 2 }
  0x2e   : > { %s1079_s11 = scalar_select %p25_p2, %s958_s14, %s27_s8  }
  0x2f   : > { %p1073_p3 = por %p1316_p12, %p34_p1  ;;  %p36_p9 = por %p35_p6, %p34_p1 }
  0x30   : > { %s158_s17 = sand.u32 1, %s958_s14   ;;  %s602_s22 = sshll.u32 %s962_s15, 5 }
  0x31   : > { %s1317_s10 = scalar_select %p1073_p3, 1, 0 }
  0x32   : > { %s601_s21 = sshll.u32 %s158_s17, 1  ;;  %s1086_s25 = scalar_lea.hbm %s1304_s0, %s602_s22 }
  0x33   : > { %s162_s26 = scalar_lea.vmem [#allocation2], %s601_s21  ;;  %p1088_p11 = pnand %p769_p7, %p36_p9 }
  0x34   : > { %s169_s27 = sshll.u32 %s162_s26, 4  ;;  %s159_s29 = scalar_lea.sflag [#allocation3], %s158_s17  ;;  %s170_s27 = int_to_ptr.vmem [resolvable:$true] %s169_s27 }
  0x35   : > { %s866_s30 = scalar_lea.hbm %s1086_s25, 32  ;;  %p868_p0 = pneg %p1088_p11 }
  0x36   : > { %p867_p13 = scmp.ne.s32.totalorder %s1086_s25, %s866_s30  ;;  %s871_s6 = scalar_lea.hbm %s1304_s0, 64 }
  0x37   : > { %p872_p1 = scmp.lt.s32.totalorder %s1086_s25, %s1304_s0  ;;  %p873_p2 = scmp.lt.s32.totalorder %s871_s6, %s866_s30 }
  0x38   : > { %p869_p5 = pnand %p868_p0, %p867_p13 }
  0x39   : > { %p874_p6 = por %p873_p2, %p872_p1 }
  0x3a   : > { %p870_p10 = pneg %p869_p5 }
  0x3c   : > { %p875_p12 = pnand %p874_p6, %p870_p10 }
  0x3e   : > { %878 = shalt.err (!%p875_p12)
}
  0x3f   : > { %s879_s21 = scalar_lea.vmem %s170_s27, 32  ;;  %s968_s17 = smov [#allocation2]  }
  0x40   : > { %p880_p7 = scmp.ne.s32.totalorder %s170_s27, %s879_s21  ;;  %s884_s22 = sshll.u32 %s968_s17, 4  ;;  %s885_s22 = int_to_ptr.vmem [resolvable:$false] %s884_s22 }
  0x41   : > { %s886_s23 = scalar_lea.vmem %s885_s22, 64  ;;  %p887_p13 = scmp.lt.s32.totalorder %s170_s27, %s885_s22 }
  0x42   : > { %p882_p9 = pnand %p880_p7, %p868_p0  ;;  %p888_p5 = scmp.lt.s32.totalorder %s886_s23, %s879_s21 }
  0x44   : > { %p883_p3 = pneg %p882_p9  ;;  %p889_p4 = por %p888_p5, %p887_p13 }
  0x46   : > { %p890_p8 = pnand %p889_p4, %p883_p3 }
  0x48   : > { %893 = shalt.err (!%p890_p8)
}
  0x49   : > { %762 = dma.hbm_to_vmem [thread:$0]  (!%p1088_p11), %s1086_s25, 32, %s170_s27, %s159_s29  }
  0x4a   : > { %p1319_p10 = scmp.ne.s32.totalorder %s1314_s20, 0 }
  0x4b   : > { %s1109_s24 = sand.u32 (!%p1319_p10), 1, %s954_s13   ;;  %p1320_p0 = scmp.ne.s32.totalorder (!%p1319_p10), %s1312_s18, 0 }
  0x4c   : > { %178 = sbr.rel (%p1319_p10) target bundleno = 358 (0x166), region = 32  ;;  %s604_s26 = sshll.u32 (!%p1319_p10), %s1109_s24, 1 }
  0x4d   : > { %s181_s30 = scalar_lea.sflag (!%p1319_p10), [#allocation3], %s1109_s24  ;;  %s184_s4 = scalar_lea.vmem (!%p1319_p10), [#allocation2], %s604_s26 }
  0x51   : > { %937 = dma.done.wait (%p1320_p0), %s181_s30, 32  }
  0x52   : > { %939 = vsyncadd (%p1320_p0), %s181_s30, 4294967264  ;;  %p1321_p4 = scmp.eq.s32.totalorder %s1012_s16, 0 }
  0x54   : > { %941 = dma.done.wait (%p1321_p4), [#allocation6], 512   ;;  %p1322_p8 = pmov %p1321_p4 }
  0x55   : > { %v217_v0 = vlaneseq  ;;  %v1129_v8 = vld [vmem:[%s184_s4] ss:$0 sm:$0xff]  ;;  %v1131_v9 = vld [vmem:[%s184_s4 + $0x1] ss:$0 sm:$0xff]  ;;  %v969_v10 = vmov 1.0|1.0  }
  0x56   : > { %943 = vsyncadd (%p1322_p8), [#allocation6], 4294966784  ;;  %v810_v13 = vld [vmem:[#allocation5] sm:$0xff]   ;;  %v811_v15 = vld [vmem:[#allocation7] sm:$0xff]   ;;  %s677_s18 = sshll.u32 %s1012_s16, 4  ;;  %s213_s20 = scalar_lea.vmem [#allocation8], %s1109_s24 }
  0x57   : > { %v1121_v1 = vshrl.u32 %v217_v0, 7  ;;  %716 = vmatprep.mubr.bf16.mxu0 %v810_v13  ;;  %736 = vmatprep.mubr.bf16.mxu1 %v811_v15  ;;  %v812_v29 = vld [vmem:[#allocation5 + $0x8] sm:$0xff]   ;;  %v813_v30 = vld [vmem:[#allocation7 + $0x8] sm:$0xff]   ;;  %s511_s25 = sshll.u32 %s213_s20, 4  ;;  %s509_s29 = scalar_lea.hbm %s1307_s3, %s677_s18  ;;  %s512_s25 = int_to_ptr.vmem [resolvable:$true] %s511_s25 }
  0x58   : > { %s499_s5 = scalar_lea.sflag [#allocation4], %s1109_s24  ;;  %s894_s6 = scalar_lea.vmem %s512_s25, 16 }
  0x59   : > { %v232_v2 = vadd.s32 112, %v1121_v1  ;;  %v233_v3 = vadd.s32 120, %v1121_v1  ;;  %v230_v4 = vadd.s32 96, %v1121_v1  ;;  %v231_v5 = vadd.s32 104, %v1121_v1  ;;  %p895_p3 = scmp.ne.s32.totalorder %s512_s25, %s894_s6  ;;  %p1337_p11 = scmp.ne.s32.totalorder %s1317_s10, 0 }
  0x5a   : > { %v228_v6 = vadd.s32 80, %v1121_v1  ;;  %v229_v7 = vadd.s32 88, %v1121_v1  ;;  %v226_v11 = vadd.s32 64, %v1121_v1  ;;  %v227_v12 = vadd.s32 72, %v1121_v1  ;;  %s970_s8 = smov [#allocation8]  }
  0x5b   : > { %vm252_vm0 = vcmp.eq.s32.totalorder %v232_v2, %v1129_v8  ;;  %vm253_vm1 = vcmp.eq.s32.totalorder %v233_v3, %v1129_v8  ;;  %vm312_vm2 = vcmp.eq.s32.totalorder %v232_v2, %v1131_v9  ;;  %vm313_vm3 = vcmp.eq.s32.totalorder %v233_v3, %v1131_v9  ;;  %p896_p1 = pnand %p895_p3, %p1337_p11  ;;  %s898_s9 = sshll.u32 %s970_s8, 4  ;;  %s899_s9 = int_to_ptr.vmem [resolvable:$false] %s898_s9 }
  0x5c   : > { %vm643_vm4 = vmpackc.low %vm253_vm1, %vm252_vm0  ;;  %vm250_vm5 = vcmp.eq.s32.totalorder %v230_v4, %v1129_v8  ;;  %vm251_vm6 = vcmp.eq.s32.totalorder %v231_v5, %v1129_v8  ;;  %vm310_vm7 = vcmp.eq.s32.totalorder %v230_v4, %v1131_v9  ;;  %vm311_vm8 = vcmp.eq.s32.totalorder %v231_v5, %v1131_v9  ;;  %s900_s16 = scalar_lea.vmem %s899_s9, 32  ;;  %p901_p6 = scmp.lt.s32.totalorder %s512_s25, %s899_s9 }
  0x5d   : > { %700 = vmatprep.subr.msk.bf16.mxu0 %vm643_vm4, %v969_v10  ;;  %vm661_vm9 = vmpackc.low %vm313_vm3, %vm312_vm2  ;;  %vm248_vm10 = vcmp.eq.s32.totalorder %v228_v6, %v1129_v8  ;;  %vm249_vm11 = vcmp.eq.s32.totalorder %v229_v7, %v1129_v8  ;;  %vm308_vm13 = vcmp.eq.s32.totalorder %v228_v6, %v1131_v9  ;;  %vm309_vm14 = vcmp.eq.s32.totalorder %v229_v7, %v1131_v9  ;;  %p897_p2 = pneg %p896_p1  ;;  %p902_p12 = scmp.lt.s32.totalorder %s900_s16, %s894_s6 }
  0x5e   : > { %720 = vmatprep.subr.msk.bf16.mxu1 %vm661_vm9, %v969_v10  ;;  %701 = vmatpush3.bf16.msk.msra.mxu0 %vm643_vm4, %v969_v10  ;;  %vm645_vm12 = vmpackc.low %vm251_vm6, %vm250_vm5  ;;  %vm246_vm2 = vcmp.eq.s32.totalorder %v226_v11, %v1129_v8  ;;  %vm247_vm3 = vcmp.eq.s32.totalorder %v227_v12, %v1129_v8  ;;  %v224_v17 = vadd.s32 48, %v1121_v1  ;;  %v225_v18 = vadd.s32 56, %v1121_v1 }
  0x5f   : > { %721 = vmatpush3.bf16.msk.msra.mxu1 %vm661_vm9, %v969_v10  ;;  %702 = vmatprep.subr.msk.bf16.mxu0 %vm645_vm12, %v969_v10  ;;  %vm663_vm15 = vmpackc.low %vm311_vm8, %vm310_vm7  ;;  %vm306_vm4 = vcmp.eq.s32.totalorder %v226_v11, %v1131_v9  ;;  %vm307_vm5 = vcmp.eq.s32.totalorder %v227_v12, %v1131_v9  ;;  %v222_v21 = vadd.s32 32, %v1121_v1  ;;  %v223_v22 = vadd.s32 40, %v1121_v1  ;;  %p903_p7 = por %p902_p12, %p901_p6 }
  0x60   : > { %722 = vmatprep.subr.msk.bf16.mxu1 %vm663_vm15, %v969_v10  ;;  %vm1157_vm0 = vmpackc.low %vm249_vm11, %vm248_vm10  ;;  %vm244_vm8 = vcmp.eq.s32.totalorder %v224_v17, %v1129_v8  ;;  %vm245_vm9 = vcmp.eq.s32.totalorder %v225_v18, %v1129_v8  ;;  %vm304_vm10 = vcmp.eq.s32.totalorder %v224_v17, %v1131_v9  ;;  %vm305_vm11 = vcmp.eq.s32.totalorder %v225_v18, %v1131_v9 }
  0x61   : > { %vm1161_vm1 = vmpackc.low %vm309_vm14, %vm308_vm13  ;;  %vm242_vm14 = vcmp.eq.s32.totalorder %v222_v21, %v1129_v8  ;;  %v220_v25 = vadd.s32 16, %v1121_v1  ;;  %v221_v26 = vadd.s32 24, %v1121_v1  ;;  %v219_v28 = vadd.s32 8, %v1121_v1  ;;  %p904_p9 = pnand %p903_p7, %p897_p2 }
  0x62   : > { %703 = vmatpush3.bf16.msk.msra.mxu0 %vm645_vm12, %v969_v10  ;;  %vm1179_vm6 = vmpackc.low %vm247_vm3, %vm246_vm2 }
  0x63   : > { %723 = vmatpush3.bf16.msk.msra.mxu1 %vm663_vm15, %v969_v10  ;;  %704 = vmatprep.subr.msk.bf16.mxu0 %vm1157_vm0, %v969_v10  ;;  %vm1183_vm7 = vmpackc.low %vm307_vm5, %vm306_vm4  ;;  %vm243_vm15 = vcmp.eq.s32.totalorder %v223_v22, %v1129_v8  ;;  %vm240_vm4 = vcmp.eq.s32.totalorder %v220_v25, %v1129_v8  ;;  %vm241_vm5 = vcmp.eq.s32.totalorder %v221_v26, %v1129_v8 }
  0x64   : > { %724 = vmatprep.subr.msk.bf16.mxu1 %vm1161_vm1, %v969_v10  ;;  %vm1205_vm12 = vmpackc.low %vm245_vm9, %vm244_vm8 }
  0x65   : > { %vm1209_vm13 = vmpackc.low %vm305_vm11, %vm304_vm10  ;;  %vm238_vm10 = vcmp.eq.s32.totalorder %v1121_v1, %v1129_v8  ;;  %vm239_vm11 = vcmp.eq.s32.totalorder %v219_v28, %v1129_v8 }
  0x66   : > { %705 = vmatpush3.bf16.msk.msra.mxu0 %vm1157_vm0, %v969_v10  ;;  %vm302_vm0 = vcmp.eq.s32.totalorder %v222_v21, %v1131_v9  ;;  %vm653_vm2 = vmpackc.low %vm243_vm15, %vm242_vm14 }
  0x67   : > { %725 = vmatpush3.bf16.msk.msra.mxu1 %vm1161_vm1, %v969_v10  ;;  %706 = vmatprep.subr.msk.bf16.mxu0 %vm1179_vm6, %v969_v10  ;;  %vm303_vm1 = vcmp.eq.s32.totalorder %v223_v22, %v1131_v9  ;;  %vm655_vm8 = vmpackc.low %vm241_vm5, %vm240_vm4 }
  0x68   : > { %726 = vmatprep.subr.msk.bf16.mxu1 %vm1183_vm7, %v969_v10  ;;  %vm1231_vm3 = vmpackc.low %vm303_vm1, %vm302_vm0 }
  0x69   : > { %vm657_vm14 = vmpackc.low %vm239_vm11, %vm238_vm10 }
  0x6a   : > { %707 = vmatpush3.bf16.msk.msra.mxu0 %vm1179_vm6, %v969_v10  ;;  %vm300_vm6 = vcmp.eq.s32.totalorder %v220_v25, %v1131_v9 }
  0x6b   : > { %727 = vmatpush3.bf16.msk.msra.mxu1 %vm1183_vm7, %v969_v10  ;;  %708 = vmatprep.subr.msk.bf16.mxu0 %vm1205_vm12, %v969_v10  ;;  %vm301_vm7 = vcmp.eq.s32.totalorder %v221_v26, %v1131_v9 }
  0x6c   : > { %728 = vmatprep.subr.msk.bf16.mxu1 %vm1209_vm13, %v969_v10  ;;  %vm673_vm9 = vmpackc.low %vm301_vm7, %vm300_vm6 }
  0x6e   : > { %709 = vmatpush3.bf16.msk.msra.mxu0 %vm1205_vm12, %v969_v10  ;;  %vm298_vm12 = vcmp.eq.s32.totalorder %v1121_v1, %v1131_v9 }
  0x6f   : > { %729 = vmatpush3.bf16.msk.msra.mxu1 %vm1209_vm13, %v969_v10  ;;  %710 = vmatprep.subr.msk.bf16.mxu0 %vm653_vm2, %v969_v10  ;;  %vm299_vm13 = vcmp.eq.s32.totalorder %v219_v28, %v1131_v9 }
  0x70   : > { %730 = vmatprep.subr.msk.bf16.mxu1 %vm1231_vm3, %v969_v10  ;;  %vm675_vm15 = vmpackc.low %vm299_vm13, %vm298_vm12 }
  0x72   : > { %711 = vmatpush3.bf16.msk.msra.mxu0 %vm653_vm2, %v969_v10 }
  0x73   : > { %731 = vmatpush3.bf16.msk.msra.mxu1 %vm1231_vm3, %v969_v10  ;;  %712 = vmatprep.subr.msk.bf16.mxu0 %vm655_vm8, %v969_v10 }
  0x74   : > { %732 = vmatprep.subr.msk.bf16.mxu1 %vm673_vm9, %v969_v10 }
  0x76   : > { %713 = vmatpush3.bf16.msk.msra.mxu0 %vm655_vm8, %v969_v10 }
  0x77   : > { %733 = vmatpush3.bf16.msk.msra.mxu1 %vm673_vm9, %v969_v10  ;;  %714 = vmatprep.subr.msk.bf16.mxu0 %vm657_vm14, %v969_v10 }
  0x78   : > { %734 = vmatprep.subr.msk.bf16.mxu1 %vm675_vm15, %v969_v10 }
  0x7a   : > { %715 = vmatpush3.bf16.msk.msra.mxu0 %vm657_vm14, %v969_v10 }
  0x7b   : > { %735 = vmatpush3.bf16.msk.msra.mxu1 %vm675_vm15, %v969_v10 }
  0x7d   : > { %717 = vmatmul.mubr.bf16.vlgmr.msra.gmra.mxu0 %v812_v29 }
  0x7e   : > { %737 = vmatmul.mubr.bf16.vlgmr.msra.gmra.mxu1 %v813_v30 }
 0x13d   : > { %v718_v31 = vpop.f32.mrf.mxu0 }
 0x13e   : > { %v738_v32 = vpop.f32.mrf.mxu1 }
 0x13f   : > { %v404_v33 = vpop.f32.mrf.mxu0  ;;  %v486_v41 = vmul.f32 %v738_v32, %v718_v31 }
 0x140   : > { %v469_v34 = vpop.f32.mrf.mxu1 }
 0x141   : > { %v719_v35 = vpop.f32.mrf.mxu0  ;;  %v484_v39 = vmul.f32 %v469_v34, %v404_v33 }
 0x142   : > { %v739_v36 = vpop.f32.mrf.mxu1 }
 0x143   : > { %v407_v37 = vpop.f32.mrf.mxu0  ;;  %v487_v43 = vmul.f32 %v739_v36, %v719_v35 }
 0x144   : > { %v472_v38 = vpop.f32.mrf.mxu1 }
 0x145   : > { %v485_v40 = vmul.f32 %v472_v38, %v407_v37 }
 0x147   : > { %v488_v42 = vadd.f32 %v485_v40, %v484_v39 }
 0x149   : > { %v489_v44 = vadd.f32 %v488_v42, %v486_v41 }
 0x14b   : > { %v490_v45 = vadd.f32 %v489_v44, %v487_v43 }
 0x14d   : > { %v491_v46 = vrot.slane %v490_v45, 4 }
 0x14f   : > { %v492_v47 = vadd.f32 %v491_v46, %v490_v45 }
 0x151   : > { %v493_v48 = vrot.slane %v492_v47, 2 }
 0x153   : > { %v494_v49 = vadd.f32 %v493_v48, %v492_v47 }
 0x155   : > { %v495_v50 = vrot.slane %v494_v49, 1 }
 0x157   : > { %v496_v51 = vadd.f32 %v495_v50, %v494_v49 }
 0x159   : > { %497 = vst [vmem:[%s213_s20] sm:$0x1] %v496_v51 }
 0x15a   : > { %907 = shalt.err (!%p904_p9)
}
 0x15b   : > { %s908_s21 = scalar_lea.hbm %s509_s29, 16  ;;  %s912_s23 = scalar_lea.hbm %s1307_s3, 32 }
 0x15c   : > { %p909_p13 = scmp.ne.s32.totalorder %s509_s29, %s908_s21  ;;  %p913_p0 = scmp.lt.s32.totalorder %s509_s29, %s1307_s3 }
 0x15d   : > { %p914_p4 = scmp.lt.s32.totalorder %s912_s23, %s908_s21 }
 0x15e   : > { %p910_p5 = pnand %p909_p13, %p1337_p11 }
 0x15f   : > { %p915_p8 = por %p914_p4, %p913_p0 }
 0x160   : > { %p911_p10 = pneg %p910_p5 }
 0x162   : > { %p916_p3 = pnand %p915_p8, %p911_p10 }
 0x164   : > { %919 = shalt.err (!%p916_p3)
}
 0x165   : > { %750 = dma.vmem_to_hbm [thread:$0]  (%p1337_p11), %s512_s25, 16, %s509_s29, %s499_s5  }
 0x166 PF: > { %s523_s30 = sand.u32 1, %s950_s12   ;;  %p1338_p1 = scmp.ne.s32.totalorder %s1313_s19, 0 }
 0x167   : > { %p1339_p2 = scmp.ge.s32.totalorder %s962_s15, 2  ;;  %s524_s4 = scalar_lea.sflag [#allocation4], %s523_s30 }
 0x169   : > { %p764_p6 = pnand %p1339_p2, %p1338_p1 }
 0x16b   : > { %p765_p12 = pneg %p764_p6 }
 0x16d   : > { %945 = dma.done.wait (%p765_p12), %s524_s4, 16  }
 0x16e   : > { %947 = vsyncadd (%p765_p12), %s524_s4, 4294967280  ;;  %p17_p7 = scmp.ge.s32.totalorder %s1063_s7, 4   ;;  %s1340_s12 = smov %s954_s13 }
 0x16f   : > { %s1341_s13 = smov %s958_s14  ;;  %s1342_s14 = smov %s1079_s11 }
 0x170   : > { %s1343_s15 = smov %s1063_s7  ;;  %19 = sbr.rel (!%p17_p7) target bundleno = 6 (0x6), region = 85 }
 0x175   :  { %528 = vsyncpa [#allocation3], 1 }
 0x176   :  { %530 = vsyncpa [#allocation3 + $0x1], 1 }
 0x177   :  { %531 = vsyncpa [#allocation6], 1 }
 0x178   :  { %532 = vsyncpa [#allocation4], 1 }
 0x179   :  { %534 = vsyncpa [#allocation4 + $0x1], 1 }

</bundles_post_ra>
